<compile_context>
chip_gen: v5e
topology: v5e:2x2
jax: 0.10.0
libtpu: 0.0.40
codegen_flags: <defaults>
</compile_context>

<pallas_src>
import functools

import jax
import jax.numpy as jnp
from jax.experimental import pallas as pl
from jax.experimental.pallas import tpu as pltpu


# Row indices of the stats-pass partial-sum output.
_SUM_F, _SUMSQ_F, _SUMSQ_B, _SUM_X, _SUMSQ_X = range(5)


def _vmem_capacity_bytes():
    try:
        return int(pltpu.get_tpu_info().vmem_capacity_bytes)
    except Exception:
        return 64 << 20                      # conservative (v7x-sized) fallback


def _pick_blocks(batch, chan, length, budget_bytes, itemsize=4):
    """Pick (Bb, Lb): lane-dense Lb (128-multiple dividing length, or the full length),
    then the largest batch divisor whose block fits the byte budget."""
    if length % 128 == 0:
        lane_opts = [d for d in range(length, 0, -128) if length % d == 0]
    else:
        lane_opts = [length]                 # full-extent lane block (wrapper guarantees fit)
    lane_blk = lane_opts[-1]
    for cand in lane_opts:
        if chan * cand * itemsize <= budget_bytes:
            lane_blk = cand
            break
    row_bytes = chan * lane_blk * itemsize
    batch_blk = 1
    for d in range(batch, 0, -1):
        if batch % d == 0 and d * row_bytes <= budget_bytes:
            batch_blk = d
            break
    return batch_blk, lane_blk


def _rn_stats_kernel(x_ref, m_ref, o_ref):
    """Per-block partial sums -> its own (1, 1, 5, C) slot (fully parallel grid)."""
    x = x_ref[...].astype(jnp.float32)                       # (Bb, C, Lb)
    m = m_ref[...].astype(jnp.float32)                       # (Bb, 1 or C, Lb)
    xf = x * m                                               # mask broadcasts over channels
    xb = x - xf

    def ch_sum(v):                                           # (Bb, C, Lb) -> (1, C)
        return jnp.sum(jnp.sum(v, axis=2), axis=0, keepdims=True)

    rows = jnp.concatenate(
        [ch_sum(xf), ch_sum(xf * xf), ch_sum(xb * xb), ch_sum(x), ch_sum(x * x)],
        axis=0)                                              # (5, C)
    o_ref[...] = rows[None, None]


def _rn_apply_kernel(p_ref, x_ref, m_ref, o_ref):
    """out = (x*w - c_off)*s + b_sum, with w/s affine in the (broadcast) mask."""
    x = x_ref[...].astype(jnp.float32)                       # (Bb, C, Lb)
    m = m_ref[...].astype(jnp.float32)                       # (Bb, 1 or C, Lb)
    w = p_ref[0] + m * p_ref[1]                              # inv_sb + m*gate*(inv_sf-inv_sb)
    s = p_ref[3] + m * p_ref[4]                              # (1+g_b) + m*gate*(g_f-g_b)
    o_ref[...] = ((x * w - p_ref[2]) * s + p_ref[5]).astype(o_ref.dtype)


def _make_fused_kernel(n_elems, eps):
    """Fused stats + apply for activations that fit in VMEM (single HBM read of x)."""
    inv_n = 1.0 / float(n_elems)
    eps = float(eps)

    def kernel(x_ref, m_ref, a_ref, o_ref):
        x = x_ref[...].astype(jnp.float32)                   # (B, C, L)
        m = m_ref[...].astype(jnp.float32)                   # (B, 1 or C, L)
        gate = a_ref[0]                                      # (C, 1), 1 iff channel has a mask row
        gf1, gb1, bsum = a_ref[1], a_ref[2], a_ref[3]        # 1+g_f, 1+g_b, b_f+b_b

        xf = x * m
        xb = x - xf

        def ch_sum(v):                                       # (B, C, L) -> (1, C, 1)
            return jnp.sum(jnp.sum(v, axis=2, keepdims=True), axis=0, keepdims=True)

        s_f = gate * ch_sum(xf)
        ss_f = gate * ch_sum(xf * xf)
        s_x = ch_sum(x)
        ss_x = ch_sum(x * x)
        ss_b = gate * ch_sum(xb * xb) + (1.0 - gate) * ss_x  # gated channels: whole-channel stats
        s_b = s_x - s_f

        mean_f = s_f * inv_n
        mean_b = s_b * inv_n
        var_f = jnp.maximum(ss_f * inv_n - mean_f * mean_f, 0.0)
        var_b = jnp.maximum(ss_b * inv_n - mean_b * mean_b, 0.0)
        inv_sf = 1.0 / jnp.sqrt(var_f + eps)
        inv_sb = 1.0 / jnp.sqrt(var_b + eps)

        c_off = mean_f * inv_sf + mean_b * inv_sb
        w = inv_sb + m * (gate * (inv_sf - inv_sb))
        s = gb1 + m * (gate * (gf1 - gb1))
        o_ref[...] = ((x * w - c_off) * s + bsum).astype(o_ref.dtype)

    return kernel


def rn_b(x, mask, fg_gamma, fg_beta, bg_gamma, bg_beta, eps=1e-5,
         *, donate_x=False, force_two_pass=False, block_budget_bytes=None):
    """RN_B forward: x (B, C, L), mask (Bm, Cm, Lm) (0 background / 1 foreground)."""
    B, C, L = x.shape
    Bm, Cm, Lm = mask.shape
    nb, nc, nl = min(B, Bm), min(C, Cm), min(L, Lm)

    # Zero-extended mask (mirrors the reference copy loop), never materialized at (B,C,L):
    # a single mask channel is broadcast inside the kernels and gated per channel.
    m = mask[:nb, :nc, :nl].astype(jnp.float32)
    if 1 < nc < C:                                           # rare corner: pad channel rows
        m = jnp.pad(m, ((0, 0), (0, C - nc), (0, 0)))
        nc_eff = C
    else:
        nc_eff = nc                                          # 1 or C
    if nb < B or nl < L:
        m = jnp.pad(m, ((0, B - nb), (0, 0), (0, L - nl)))

    masked_ch = C if nc_eff == C else 1
    gate = (jnp.arange(C) < masked_ch).astype(jnp.float32)   # (C,)

    g_f = 1.0 + fg_gamma.astype(jnp.float32)
    g_b = 1.0 + bg_gamma.astype(jnp.float32)
    b_sum = fg_beta.astype(jnp.float32) + bg_beta.astype(jnp.float32)
    n = float(B * L)

    vmem_cap = _vmem_capacity_bytes()
    scoped_limit = (vmem_cap // 4) * 3                       # headroom below physical VMEM
    x_bytes = B * C * L * 4
    m_bytes = B * nc_eff * L * 4

    # ----- Fused single-sweep path: ~1 read + 1 write of x through HBM -----
    if (not force_two_pass) and (10 * x_bytes + 2 * m_bytes <= scoped_limit):
        aff = jnp.stack([gate, g_f, g_b, b_sum], axis=0)[..., None]   # (4, C, 1)
        return pl.pallas_call(
            _make_fused_kernel(B * L, eps),
            out_shape=jax.ShapeDtypeStruct((B, C, L), x.dtype),
            grid=(1,),
            in_specs=[pl.BlockSpec((B, C, L), lambda i: (0, 0, 0)),
                      pl.BlockSpec((B, nc_eff, L), lambda i: (0, 0, 0)),
                      pl.BlockSpec((4, C, 1), lambda i: (0, 0, 0))],
            out_specs=pl.BlockSpec((B, C, L), lambda i: (0, 0, 0)),
            compiler_params=pltpu.CompilerParams(
                dimension_semantics=("arbitrary",),
                vmem_limit_bytes=scoped_limit),
        )(x, m, aff)

    # ----- Two-pass tiled path -----
    budget = block_budget_bytes or max(scoped_limit // 8, C * 128 * 4)
    xx, mm, Lp = x, m, L
    if L % 128 != 0 and C * L * 4 > budget:
        # Lane-pad so stores stay unmasked; zero padding does not perturb the sums
        # (n above uses the original L).
        Lp = ((L + 127) // 128) * 128
        xx = jnp.pad(x, ((0, 0), (0, 0), (0, Lp - L)))
        mm = jnp.pad(m, ((0, 0), (0, 0), (0, Lp - L)))

    Bb, Lb = _pick_blocks(B, C, Lp, budget)
    grid = (B // Bb, Lp // Lb)
    x_spec = pl.BlockSpec((Bb, C, Lb), lambda b, l: (b, 0, l))
    m_spec = pl.BlockSpec((Bb, nc_eff, Lb), lambda b, l: (b, 0, l))
    cparams = pltpu.CompilerParams(
        dimension_semantics=("parallel", "parallel"),
        vmem_limit_bytes=scoped_limit)

    # Pass 1: fully parallel per-block partial sums (both TensorCores can stream x on
    # v7x); tiny partials reduced here.
    partials = pl.pallas_call(
        _rn_stats_kernel,
        out_shape=jax.ShapeDtypeStruct((grid[0], grid[1], 5, C), jnp.float32),
        grid=grid,
        in_specs=[x_spec, m_spec],
        out_specs=pl.BlockSpec((1, 1, 5, C), lambda b, l: (b, l, 0, 0)),
        compiler_params=cparams,
    )(xx, mm)
    sums = jnp.sum(partials, axis=(0, 1))                    # (5, C)

    # Per-channel constants (tiny (C,)-sized math, hoisted out of the hot loop).
    # Channels without a mask row are pure background: fg stats -> 0, bg stats ->
    # whole-channel stats. Exact for arbitrary (soft) mask values.
    s_f = gate * sums[_SUM_F]
    ss_f = gate * sums[_SUMSQ_F]
    ss_b = gate * sums[_SUMSQ_B] + (1.0 - gate) * sums[_SUMSQ_X]
    s_b = sums[_SUM_X] - s_f
    mean_f = s_f / n
    mean_b = s_b / n
    var_f = jnp.maximum(ss_f / n - mean_f * mean_f, 0.0)
    var_b = jnp.maximum(ss_b / n - mean_b * mean_b, 0.0)
    inv_sf = 1.0 / jnp.sqrt(var_f + eps)
    inv_sb = 1.0 / jnp.sqrt(var_b + eps)

    params = jnp.stack([
        inv_sb,
        gate * (inv_sf - inv_sb),
        mean_f * inv_sf + mean_b * inv_sb,
        g_b,
        gate * (g_f - g_b),
        b_sum,
    ], axis=0)[..., None]                                    # (6, C, 1)

    aliases = {1: 0} if (donate_x and Lp == L) else {}
    out = pl.pallas_call(
        _rn_apply_kernel,
        out_shape=jax.ShapeDtypeStruct((B, C, Lp), x.dtype),
        grid=grid,
        in_specs=[pl.BlockSpec((6, C, 1), lambda b, l: (0, 0, 0)), x_spec, m_spec],
        out_specs=x_spec,
        compiler_params=cparams,
        input_output_aliases=aliases,
    )(params, xx, mm)
    return out if Lp == L else out[:, :, :L]


def rn_b_ref(x, mask, fg_gamma, fg_beta, bg_gamma, bg_beta, eps=1e-5):
    """Pure-JAX reference mirroring the PyTorch forward."""
    B, C, L = x.shape
    bm_, cm_, lm_ = mask.shape
    nb, nc, nl = min(B, bm_), min(C, cm_), min(L, lm_)
    mask1 = jnp.zeros(x.shape, jnp.float32)
    mask1 = mask1.at[:nb, :nc, :nl].set(mask[:nb, :nc, :nl].astype(jnp.float32))
    xf = x.astype(jnp.float32)

    def bn(v):
        mu = jnp.mean(v, axis=(0, 2), keepdims=True)
        var = jnp.mean((v - mu) ** 2, axis=(0, 2), keepdims=True)
        return (v - mu) / jnp.sqrt(var + eps)

    rn = bn(xf * mask1) + bn(xf * (1.0 - mask1))
    fg = rn * mask1 * (1.0 + fg_gamma[None, :, None]) + fg_beta[None, :, None]
    bg = rn * (1.0 - mask1) * (1.0 + bg_gamma[None, :, None]) + bg_beta[None, :, None]
    return (fg + bg).astype(x.dtype)


if __name__ == "__main__":
    key = jax.random.PRNGKey(0)
    (kx, km, k1, k2, k3, k4,
     kx2, km2, k5, k6, k7, k8) = jax.random.split(key, 12)

    # Case 1 (fused in-VMEM path): x is (B, C, L) with L = H*W (BatchNorm1d in the
    # module implies a 3-D input); binary (B, 1, L) mask as per the docstring.
    B, C, H, W = 2, 4, 16, 16
    L = H * W
    x = jax.random.normal(kx, (B, C, L), dtype=jnp.float32)
    mask = (jax.random.uniform(km, (B, 1, L)) > 0.5).astype(jnp.float32)
    fg_gamma = 0.1 * jax.random.normal(k1, (C,), dtype=jnp.float32)
    fg_beta = 0.1 * jax.random.normal(k2, (C,), dtype=jnp.float32)
    bg_gamma = 0.1 * jax.random.normal(k3, (C,), dtype=jnp.float32)
    bg_beta = 0.1 * jax.random.normal(k4, (C,), dtype=jnp.float32)

    out = jax.jit(rn_b)(x, mask, fg_gamma, fg_beta, bg_gamma, bg_beta)
    jax.block_until_ready(out)
    ref = rn_b_ref(x, mask, fg_gamma, fg_beta, bg_gamma, bg_beta)
    assert out.shape == x.shape and out.dtype == x.dtype
    err = float(jnp.max(jnp.abs(out - ref)))
    assert jnp.allclose(out, ref, atol=1e-4, rtol=1e-4), err

    # Case 2 (two-pass tiled path, forced via a tiny block budget so the grid has
    # several parallel steps on each axis): soft mask, fewer channels and shorter
    # spatial extent than x (exercises gating + zero-extension).
    B2, C2, L2 = 4, 8, 1024
    x2 = jax.random.normal(kx2, (B2, C2, L2), dtype=jnp.float32)
    mask2 = jax.random.uniform(km2, (B2, 1, 1000), dtype=jnp.float32)
    fg_gamma2 = 0.1 * jax.random.normal(k5, (C2,), dtype=jnp.float32)
    fg_beta2 = 0.1 * jax.random.normal(k6, (C2,), dtype=jnp.float32)
    bg_gamma2 = 0.1 * jax.random.normal(k7, (C2,), dtype=jnp.float32)
    bg_beta2 = 0.1 * jax.random.normal(k8, (C2,), dtype=jnp.float32)

    two_pass = jax.jit(functools.partial(rn_b, force_two_pass=True,
                                         block_budget_bytes=16 * 1024))
    out2 = two_pass(x2, mask2, fg_gamma2, fg_beta2, bg_gamma2, bg_beta2)
    jax.block_until_ready(out2)
    ref2 = rn_b_ref(x2, mask2, fg_gamma2, fg_beta2, bg_gamma2, bg_beta2)
    err2 = float(jnp.max(jnp.abs(out2 - ref2)))
    assert out2.shape == x2.shape and out2.dtype == x2.dtype
    assert jnp.allclose(out2, ref2, atol=1e-4, rtol=1e-4), err2

    print("KERNEL_OK")
</pallas_src>

<mosaic_0001>
module attributes {stable_mosaic.version = 11 : i64} {
  func.func @kernel(%arg0: i32, %arg1: memref<2x4x256xf32, #tpu.memory_space<vmem>>, %arg2: memref<2x1x256xf32, #tpu.memory_space<vmem>>, %arg3: memref<4x4x1xf32, #tpu.memory_space<vmem>>, %arg4: memref<2x4x256xf32, #tpu.memory_space<vmem>>) attributes {dimension_semantics = [#tpu.dimension_semantics<arbitrary>], iteration_bounds = array<i64: 1>, scalar_prefetch = 0 : i64, scratch_operands = 0 : i64, tpu.core_type = #tpu.core_type<tc>, window_params = [{pipeline_mode = #tpu.pipeline_mode<synchronous>, transform_indices = @transform_0, window_bounds = array<i64: 2, 4, 256>}, {pipeline_mode = #tpu.pipeline_mode<synchronous>, transform_indices = @transform_1, window_bounds = array<i64: 2, 1, 256>}, {pipeline_mode = #tpu.pipeline_mode<synchronous>, transform_indices = @transform_2, window_bounds = array<i64: 4, 4, 1>}, {pipeline_mode = #tpu.pipeline_mode<synchronous>, transform_indices = @transform_3, window_bounds = array<i64: 2, 4, 256>}]} {
    %c0 = arith.constant 0 : index
    %c0_0 = arith.constant 0 : index
    %c0_1 = arith.constant 0 : index
    %0 = vector.load %arg1[%c0, %c0_0, %c0_1] : memref<2x4x256xf32, #tpu.memory_space<vmem>>, vector<2x4x256xf32>
    %c0_2 = arith.constant 0 : index
    %c0_3 = arith.constant 0 : index
    %c0_4 = arith.constant 0 : index
    %1 = vector.load %arg2[%c0_2, %c0_3, %c0_4] : memref<2x1x256xf32, #tpu.memory_space<vmem>>, vector<2x1x256xf32>
    %c0_5 = arith.constant 0 : index
    %c0_6 = arith.constant 0 : index
    %c0_7 = arith.constant 0 : index
    %2 = vector.load %arg3[%c0_5, %c0_6, %c0_7] : memref<4x4x1xf32, #tpu.memory_space<vmem>>, vector<1x4x1xf32>
    %3 = vector.shape_cast %2 : vector<1x4x1xf32> to vector<4x1xf32>
    %c1 = arith.constant 1 : index
    %c0_8 = arith.constant 0 : index
    %c0_9 = arith.constant 0 : index
    %4 = vector.load %arg3[%c1, %c0_8, %c0_9] : memref<4x4x1xf32, #tpu.memory_space<vmem>>, vector<1x4x1xf32>
    %5 = vector.shape_cast %4 : vector<1x4x1xf32> to vector<4x1xf32>
    %c2 = arith.constant 2 : index
    %c0_10 = arith.constant 0 : index
    %c0_11 = arith.constant 0 : index
    %6 = vector.load %arg3[%c2, %c0_10, %c0_11] : memref<4x4x1xf32, #tpu.memory_space<vmem>>, vector<1x4x1xf32>
    %7 = vector.shape_cast %6 : vector<1x4x1xf32> to vector<4x1xf32>
    %c3 = arith.constant 3 : index
    %c0_12 = arith.constant 0 : index
    %c0_13 = arith.constant 0 : index
    %8 = vector.load %arg3[%c3, %c0_12, %c0_13] : memref<4x4x1xf32, #tpu.memory_space<vmem>>, vector<1x4x1xf32>
    %9 = vector.shape_cast %8 : vector<1x4x1xf32> to vector<4x1xf32>
    %10 = vector.broadcast %1 : vector<2x1x256xf32> to vector<2x4x256xf32>
    %11 = arith.mulf %0, %10 : vector<2x4x256xf32>
    %12 = arith.subf %0, %11 : vector<2x4x256xf32>
    %cst = arith.constant dense<0.000000e+00> : vector<2x4xf32>
    %13 = vector.multi_reduction <add>, %11, %cst [2] : vector<2x4x256xf32> to vector<2x4xf32>
    %14 = vector.shape_cast %13 : vector<2x4xf32> to vector<2x4x1xf32>
    %cst_14 = arith.constant dense<0.000000e+00> : vector<4x1xf32>
    %15 = vector.multi_reduction <add>, %14, %cst_14 [0] : vector<2x4x1xf32> to vector<4x1xf32>
    %16 = vector.shape_cast %15 : vector<4x1xf32> to vector<1x4x1xf32>
    %17 = vector.shape_cast %3 : vector<4x1xf32> to vector<1x4x1xf32>
    %18 = arith.mulf %17, %16 : vector<1x4x1xf32>
    %19 = arith.mulf %11, %11 : vector<2x4x256xf32>
    %cst_15 = arith.constant dense<0.000000e+00> : vector<2x4xf32>
    %20 = vector.multi_reduction <add>, %19, %cst_15 [2] : vector<2x4x256xf32> to vector<2x4xf32>
    %21 = vector.shape_cast %20 : vector<2x4xf32> to vector<2x4x1xf32>
    %cst_16 = arith.constant dense<0.000000e+00> : vector<4x1xf32>
    %22 = vector.multi_reduction <add>, %21, %cst_16 [0] : vector<2x4x1xf32> to vector<4x1xf32>
    %23 = vector.shape_cast %22 : vector<4x1xf32> to vector<1x4x1xf32>
    %24 = vector.shape_cast %3 : vector<4x1xf32> to vector<1x4x1xf32>
    %25 = arith.mulf %24, %23 : vector<1x4x1xf32>
    %cst_17 = arith.constant dense<0.000000e+00> : vector<2x4xf32>
    %26 = vector.multi_reduction <add>, %0, %cst_17 [2] : vector<2x4x256xf32> to vector<2x4xf32>
    %27 = vector.shape_cast %26 : vector<2x4xf32> to vector<2x4x1xf32>
    %cst_18 = arith.constant dense<0.000000e+00> : vector<4x1xf32>
    %28 = vector.multi_reduction <add>, %27, %cst_18 [0] : vector<2x4x1xf32> to vector<4x1xf32>
    %29 = vector.shape_cast %28 : vector<4x1xf32> to vector<1x4x1xf32>
    %30 = arith.mulf %0, %0 : vector<2x4x256xf32>
    %cst_19 = arith.constant dense<0.000000e+00> : vector<2x4xf32>
    %31 = vector.multi_reduction <add>, %30, %cst_19 [2] : vector<2x4x256xf32> to vector<2x4xf32>
    %32 = vector.shape_cast %31 : vector<2x4xf32> to vector<2x4x1xf32>
    %cst_20 = arith.constant dense<0.000000e+00> : vector<4x1xf32>
    %33 = vector.multi_reduction <add>, %32, %cst_20 [0] : vector<2x4x1xf32> to vector<4x1xf32>
    %34 = vector.shape_cast %33 : vector<4x1xf32> to vector<1x4x1xf32>
    %35 = arith.mulf %12, %12 : vector<2x4x256xf32>
    %cst_21 = arith.constant dense<0.000000e+00> : vector<2x4xf32>
    %36 = vector.multi_reduction <add>, %35, %cst_21 [2] : vector<2x4x256xf32> to vector<2x4xf32>
    %37 = vector.shape_cast %36 : vector<2x4xf32> to vector<2x4x1xf32>
    %cst_22 = arith.constant dense<0.000000e+00> : vector<4x1xf32>
    %38 = vector.multi_reduction <add>, %37, %cst_22 [0] : vector<2x4x1xf32> to vector<4x1xf32>
    %39 = vector.shape_cast %38 : vector<4x1xf32> to vector<1x4x1xf32>
    %40 = vector.shape_cast %3 : vector<4x1xf32> to vector<1x4x1xf32>
    %41 = arith.mulf %40, %39 : vector<1x4x1xf32>
    %cst_23 = arith.constant 1.000000e+00 : f32
    %42 = vector.broadcast %cst_23 : f32 to vector<4x1xf32>
    %43 = arith.subf %42, %3 : vector<4x1xf32>
    %44 = vector.shape_cast %43 : vector<4x1xf32> to vector<1x4x1xf32>
    %45 = arith.mulf %44, %34 : vector<1x4x1xf32>
    %46 = arith.addf %41, %45 : vector<1x4x1xf32>
    %47 = arith.subf %29, %18 : vector<1x4x1xf32>
    %cst_24 = arith.constant 0.001953125 : f32
    %48 = vector.broadcast %cst_24 : f32 to vector<1x4x1xf32>
    %49 = arith.mulf %18, %48 : vector<1x4x1xf32>
    %cst_25 = arith.constant 0.001953125 : f32
    %50 = vector.broadcast %cst_25 : f32 to vector<1x4x1xf32>
    %51 = arith.mulf %47, %50 : vector<1x4x1xf32>
    %cst_26 = arith.constant 0.001953125 : f32
    %52 = vector.broadcast %cst_26 : f32 to vector<1x4x1xf32>
    %53 = arith.mulf %25, %52 : vector<1x4x1xf32>
    %54 = arith.mulf %49, %49 : vector<1x4x1xf32>
    %55 = arith.subf %53, %54 : vector<1x4x1xf32>
    %cst_27 = arith.constant 0.000000e+00 : f32
    %56 = vector.broadcast %cst_27 : f32 to vector<1x4x1xf32>
    %57 = arith.maximumf %55, %56 : vector<1x4x1xf32>
    %cst_28 = arith.constant 0.001953125 : f32
    %58 = vector.broadcast %cst_28 : f32 to vector<1x4x1xf32>
    %59 = arith.mulf %46, %58 : vector<1x4x1xf32>
    %60 = arith.mulf %51, %51 : vector<1x4x1xf32>
    %61 = arith.subf %59, %60 : vector<1x4x1xf32>
    %cst_29 = arith.constant 0.000000e+00 : f32
    %62 = vector.broadcast %cst_29 : f32 to vector<1x4x1xf32>
    %63 = arith.maximumf %61, %62 : vector<1x4x1xf32>
    %cst_30 = arith.constant 9.99999974E-6 : f32
    %64 = vector.broadcast %cst_30 : f32 to vector<1x4x1xf32>
    %65 = arith.addf %57, %64 : vector<1x4x1xf32>
    %66 = math.sqrt %65 : vector<1x4x1xf32>
    %cst_31 = arith.constant 1.000000e+00 : f32
    %67 = vector.broadcast %cst_31 : f32 to vector<1x4x1xf32>
    %68 = arith.divf %67, %66 : vector<1x4x1xf32>
    %cst_32 = arith.constant 9.99999974E-6 : f32
    %69 = vector.broadcast %cst_32 : f32 to vector<1x4x1xf32>
    %70 = arith.addf %63, %69 : vector<1x4x1xf32>
    %71 = math.sqrt %70 : vector<1x4x1xf32>
    %cst_33 = arith.constant 1.000000e+00 : f32
    %72 = vector.broadcast %cst_33 : f32 to vector<1x4x1xf32>
    %73 = arith.divf %72, %71 : vector<1x4x1xf32>
    %74 = arith.mulf %49, %68 : vector<1x4x1xf32>
    %75 = arith.mulf %51, %73 : vector<1x4x1xf32>
    %76 = arith.addf %74, %75 : vector<1x4x1xf32>
    %77 = arith.subf %68, %73 : vector<1x4x1xf32>
    %78 = vector.shape_cast %3 : vector<4x1xf32> to vector<1x4x1xf32>
    %79 = arith.mulf %78, %77 : vector<1x4x1xf32>
    %80 = vector.broadcast %1 : vector<2x1x256xf32> to vector<2x4x256xf32>
    %81 = vector.broadcast %79 : vector<1x4x1xf32> to vector<2x4x256xf32>
    %82 = arith.mulf %80, %81 : vector<2x4x256xf32>
    %83 = vector.broadcast %73 : vector<1x4x1xf32> to vector<2x4x256xf32>
    %84 = arith.addf %83, %82 : vector<2x4x256xf32>
    %85 = arith.subf %5, %7 : vector<4x1xf32>
    %86 = arith.mulf %3, %85 : vector<4x1xf32>
    %87 = vector.shape_cast %86 : vector<4x1xf32> to vector<1x4x1xf32>
    %88 = vector.broadcast %1 : vector<2x1x256xf32> to vector<2x4x256xf32>
    %89 = vector.broadcast %87 : vector<1x4x1xf32> to vector<2x4x256xf32>
    %90 = arith.mulf %88, %89 : vector<2x4x256xf32>
    %91 = vector.shape_cast %7 : vector<4x1xf32> to vector<1x4x1xf32>
    %92 = vector.broadcast %91 : vector<1x4x1xf32> to vector<2x4x256xf32>
    %93 = arith.addf %92, %90 : vector<2x4x256xf32>
    %94 = arith.mulf %0, %84 : vector<2x4x256xf32>
    %95 = vector.broadcast %76 : vector<1x4x1xf32> to vector<2x4x256xf32>
    %96 = arith.subf %94, %95 : vector<2x4x256xf32>
    %97 = arith.mulf %96, %93 : vector<2x4x256xf32>
    %98 = vector.shape_cast %9 : vector<4x1xf32> to vector<1x4x1xf32>
    %99 = vector.broadcast %98 : vector<1x4x1xf32> to vector<2x4x256xf32>
    %100 = arith.addf %97, %99 : vector<2x4x256xf32>
    %c0_34 = arith.constant 0 : index
    %c0_35 = arith.constant 0 : index
    %c0_36 = arith.constant 0 : index
    %101 = vector.load %arg4[%c0_34, %c0_35, %c0_36] : memref<2x4x256xf32, #tpu.memory_space<vmem>>, vector<2x4x256xf32>
    tpu.vector_store %arg4[%c0_34, %c0_35, %c0_36], %100 {strides = array<i32>} : memref<2x4x256xf32, #tpu.memory_space<vmem>>, vector<2x4x256xf32>,
    return
  }
  func.func @transform_0(%arg0: i32) -> (i32, i32, i32) {
    %c0_i32 = arith.constant 0 : i32
    %c0_i32_0 = arith.constant 0 : i32
    %c0_i32_1 = arith.constant 0 : i32
    %c0_i32_2 = arith.constant 0 : i32
    return %c0_i32, %c0_i32_0, %c0_i32_1 : i32, i32, i32
  }
  func.func @transform_1(%arg0: i32) -> (i32, i32, i32) {
    %c0_i32 = arith.constant 0 : i32
    %c0_i32_0 = arith.constant 0 : i32
    %c0_i32_1 = arith.constant 0 : i32
    %c0_i32_2 = arith.constant 0 : i32
    return %c0_i32, %c0_i32_0, %c0_i32_1 : i32, i32, i32
  }
  func.func @transform_2(%arg0: i32) -> (i32, i32, i32) {
    %c0_i32 = arith.constant 0 : i32
    %c0_i32_0 = arith.constant 0 : i32
    %c0_i32_1 = arith.constant 0 : i32
    %c0_i32_2 = arith.constant 0 : i32
    return %c0_i32, %c0_i32_0, %c0_i32_1 : i32, i32, i32
  }
  func.func @transform_3(%arg0: i32) -> (i32, i32, i32) {
    %c0_i32 = arith.constant 0 : i32
    %c0_i32_0 = arith.constant 0 : i32
    %c0_i32_1 = arith.constant 0 : i32
    %c0_i32_2 = arith.constant 0 : i32
    return %c0_i32, %c0_i32_0, %c0_i32_1 : i32, i32, i32
  }
}

</mosaic_0001>

<bundles_post_ra>
// kernel: rn_b.1
= control target key start
LH: loop header
LB: loop body
LE: loop exit
PB: predicated region body
PF: predicated region fallthrough
CT: control target
= control target key end

     0   :  { %s552_s0 = inlined_call_operand.vmem [shape: f32[2,4,256], index: 0, kind: input, shape index: {}]   ;;  %s553_s1 = inlined_call_operand.vmem [shape: f32[2,1,256], index: 1, kind: input, shape index: {}]   ;;  %s554_s2 = inlined_call_operand.vmem [shape: f32[4,4,1], index: 2, kind: input, shape index: {}]   ;;  %s555_s3 = inlined_call_operand.hbm [shape: f32[2,4,256], index: 3, kind: output, shape index: {}]  }
   0x1   :  { %v17_v0 = vld [vmem:[%s553_s1] sm:$0x3]  ;;  %v18_v3 = vld [vmem:[%s553_s1 + $0x2] sm:$0x3] }
   0x2   :  { %v438_v1 = vperm.slane %v17_v0, 0  ;;  %v440_v2 = vperm.slane %v17_v0, 1 }
   0x3   :  { %8 = vsyncpa [#allocation3], 0  ;;  %vm38_vm0 = vcmask 1043456   ;;  %v445_v4 = vperm.slane %v18_v3, 0  ;;  %v447_v5 = vperm.slane %v18_v3, 1  ;;  %v452_v6 = vld [vmem:[%s552_s0] sm:$0xff] }
   0x4   :  { %v36_v7 = vrot.slane %v440_v2, 4  ;;  %v458_v8 = vld [vmem:[%s552_s0 + $0x8] sm:$0xff]  ;;  %v129_v30 = vmul.f32 %v452_v6, %v452_v6  ;;  %s353_s29 = sshll.u32 %s555_s3, 4  ;;  %s413_s30 = smov 128   ;;  %s354_s29 = int_to_ptr.hbm [resolvable:$true] %s353_s29 }
   0x5   :  { %v37_v9 = vrot.slane %v447_v5, 4  ;;  %v130_v31 = vmul.f32 %v458_v8, %v458_v8  ;;  %s414_s4 = smov 8  }
   0x6   :  { %v39_v10 = vsel %vm38_vm0, %v438_v1, %v36_v7 }
   0x7   :  { %v43_v11 = vmul.f32 %v39_v10, %v452_v6  ;;  %v40_v12 = vsel %vm38_vm0, %v445_v4, %v37_v9 }
   0x8   :  { %v44_v13 = vmul.f32 %v40_v12, %v458_v8 }
   0x9   :  { %49 = vst [vmem:[#allocation1] ss:$2 sm:$0xff] %v43_v11  ;;  %v74_v14 = vmul.f32 %v43_v11, %v43_v11  ;;  %v45_v34 = vsub.f32 %v452_v6, %v43_v11 }
   0xa   :  { %53 = vst [vmem:[#allocation1 + $0x10] ss:$2 sm:$0xff] %v44_v13  ;;  %v75_v15 = vmul.f32 %v44_v13, %v44_v13  ;;  %v46_v40 = vsub.f32 %v458_v8, %v44_v13 }
   0xb   :  { %v157_v41 = vmul.f32 %v45_v34, %v45_v34 }
   0xc   :  { %v158_v44 = vmul.f32 %v46_v40, %v46_v40 }
  0x10   :  { %v50_v16 = vld.sshfl [vmem:[#allocation1] sm:$0xff pattern:$0x75316420]  ;;  %v51_v17 = vld.sshfl [vmem:[#allocation1 + $0x8] sm:$0xff pattern:$0x75316420] }
  0x11   :  { %v60_v18 = vsel %vm38_vm0, %v50_v16, 0.0  ;;  %v61_v19 = vsel %vm38_vm0, %v51_v17, 0.0  ;;  %78 = vst [vmem:[#allocation1] ss:$2 sm:$0xff] %v74_v14  ;;  %v410_v17 = vmov 0  }
  0x12   :  { %v62_v20 = vadd.f32 %v61_v19, %v60_v18  ;;  %v54_v21 = vld.sshfl [vmem:[#allocation1 + $0x10] sm:$0xff pattern:$0x75316420]  ;;  %v55_v22 = vld.sshfl [vmem:[#allocation1 + $0x18] sm:$0xff pattern:$0x75316420]  ;;  %373 = vset.pattern.permute.xlu2 %v410_v17  ;;  %374 = vset.pattern.permute.xlu0 %v410_v17 }
  0x13   :  { %82 = vst [vmem:[#allocation1 + $0x10] ss:$2 sm:$0xff] %v75_v15  ;;  %v65_v23 = vsel %vm38_vm0, %v54_v21, 0.0  ;;  %v66_v24 = vsel %vm38_vm0, %v55_v22, 0.0  ;;  %375 = vset.pattern.permute.xlu1 %v410_v17 }
  0x14   :  { %63 = vadd.xlane.f32.xlu0 %v62_v20  ;;  %v67_v27 = vadd.f32 %v66_v24, %v65_v23 }
  0x18   :  { %v79_v25 = vld.sshfl [vmem:[#allocation1] sm:$0xff pattern:$0x75316420]  ;;  %v80_v26 = vld.sshfl [vmem:[#allocation1 + $0x8] sm:$0xff pattern:$0x75316420] }
  0x19   :  { %105 = vst [vmem:[#allocation1] ss:$2 sm:$0xff] %v452_v6  ;;  %v89_v7 = vsel %vm38_vm0, %v79_v25, 0.0  ;;  %v90_v9 = vsel %vm38_vm0, %v80_v26, 0.0  ;;  %v502_v25 = vld [vmem:[%s554_s2] sm:$0xf] }
  0x1a   :  { %v83_v28 = vld.sshfl [vmem:[#allocation1 + $0x10] sm:$0xff pattern:$0x75316420]  ;;  %v84_v29 = vld.sshfl [vmem:[#allocation1 + $0x18] sm:$0xff pattern:$0x75316420]  ;;  %v91_v12 = vadd.f32 %v90_v9, %v89_v7 }
  0x1b   :  { %109 = vst [vmem:[#allocation1 + $0x10] ss:$2 sm:$0xff] %v458_v8  ;;  %v94_v10 = vsel %vm38_vm0, %v83_v28, 0.0  ;;  %v95_v11 = vsel %vm38_vm0, %v84_v29, 0.0  ;;  %v186_v28 = vsub.f32 1.0, %v502_v25 }
  0x1c   :  { %68 = vadd.xlane.f32.xlu0 %v67_v27  ;;  %v96_v13 = vadd.f32 %v95_v11, %v94_v10 }
  0x20   :  { %v106_v32 = vld.sshfl [vmem:[#allocation1] sm:$0xff pattern:$0x75316420]  ;;  %v107_v33 = vld.sshfl [vmem:[#allocation1 + $0x8] sm:$0xff pattern:$0x75316420] }
  0x21   :  { %v116_v35 = vsel %vm38_vm0, %v106_v32, 0.0  ;;  %v117_v36 = vsel %vm38_vm0, %v107_v33, 0.0  ;;  %133 = vst [vmem:[#allocation1] ss:$2 sm:$0xff] %v129_v30 }
  0x22   :  { %v118_v37 = vadd.f32 %v117_v36, %v116_v35  ;;  %v110_v38 = vld.sshfl [vmem:[#allocation1 + $0x10] sm:$0xff pattern:$0x75316420]  ;;  %v111_v39 = vld.sshfl [vmem:[#allocation1 + $0x18] sm:$0xff pattern:$0x75316420] }
  0x23   :  { %137 = vst [vmem:[#allocation1 + $0x10] ss:$2 sm:$0xff] %v130_v31  ;;  %v121_v42 = vsel %vm38_vm0, %v110_v38, 0.0  ;;  %v122_v43 = vsel %vm38_vm0, %v111_v39, 0.0 }
  0x24   :  { %119 = vadd.xlane.f32.xlu1 %v118_v37  ;;  %v123_v47 = vadd.f32 %v122_v43, %v121_v42 }
  0x28   :  { %v134_v45 = vld.sshfl [vmem:[#allocation1] sm:$0xff pattern:$0x75316420]  ;;  %v135_v46 = vld.sshfl [vmem:[#allocation1 + $0x8] sm:$0xff pattern:$0x75316420] }
  0x29   :  { %v144_v48 = vsel %vm38_vm0, %v134_v45, 0.0  ;;  %v145_v49 = vsel %vm38_vm0, %v135_v46, 0.0  ;;  %161 = vst [vmem:[#allocation1] ss:$2 sm:$0xff] %v157_v41 }
  0x2a   :  { %v146_v50 = vadd.f32 %v145_v49, %v144_v48  ;;  %v138_v51 = vld.sshfl [vmem:[#allocation1 + $0x10] sm:$0xff pattern:$0x75316420]  ;;  %v139_v52 = vld.sshfl [vmem:[#allocation1 + $0x18] sm:$0xff pattern:$0x75316420] }
  0x2b   :  { %165 = vst [vmem:[#allocation1 + $0x10] ss:$2 sm:$0xff] %v158_v44  ;;  %v149_v53 = vsel %vm38_vm0, %v138_v51, 0.0  ;;  %v150_v54 = vsel %vm38_vm0, %v139_v52, 0.0 }
  0x2c   :  { %147 = vadd.xlane.f32.xlu2 %v146_v50  ;;  %124 = vadd.xlane.f32.xlu1 %v123_v47  ;;  %v151_v55 = vadd.f32 %v150_v54, %v149_v53 }
  0x30   :  { %v162_v56 = vld.sshfl [vmem:[#allocation1] sm:$0xff pattern:$0x75316420]  ;;  %v163_v57 = vld.sshfl [vmem:[#allocation1 + $0x8] sm:$0xff pattern:$0x75316420] }
  0x31   :  { %v172_v58 = vsel %vm38_vm0, %v162_v56, 0.0  ;;  %v173_v59 = vsel %vm38_vm0, %v163_v57, 0.0 }
  0x32   :  { %v166_v60 = vld.sshfl [vmem:[#allocation1 + $0x10] sm:$0xff pattern:$0x75316420]  ;;  %v167_v61 = vld.sshfl [vmem:[#allocation1 + $0x18] sm:$0xff pattern:$0x75316420]  ;;  %v174_v62 = vadd.f32 %v173_v59, %v172_v58 }
  0x33   :  { %v177_v63 = vsel %vm38_vm0, %v166_v60, 0.0  ;;  %v178_v0 = vsel %vm38_vm0, %v167_v61, 0.0  ;;  %v365_v60 = vld [vmem:[%s554_s2 + $0x4] sm:$0xf]  ;;  %v366_v61 = vld [vmem:[%s554_s2 + $0x8] sm:$0xf] }
  0x34   :  { %152 = vadd.xlane.f32.xlu2 %v151_v55  ;;  %v179_v3 = vadd.f32 %v178_v0, %v177_v63  ;;  %175 = vadd.xlane.f32.xlu0 %v174_v62  ;;  %v279_v63 = vsub.f32 %v365_v60, %v366_v61 }
  0x36   :  { %180 = vadd.xlane.f32.xlu1 %v179_v3  ;;  %v280_v3 = vmul.f32 %v279_v63, %v502_v25 }
  0x3c   :  { %92 = vadd.xlane.f32.xlu2 %v91_v12  ;;  %97 = vadd.xlane.f32.xlu0 %v96_v13 }
  0x50   :  { %283 = vperm.xlu0 %374, %v280_v3  }
  0x87   :  { %v64_v14 = vpop.xlane.xlu0 %63 }
  0x88   :  { %v70_v20 = vsel %vm38_vm0, %v64_v14, 0.0 }
  0x8f   :  { %v69_v16 = vpop.xlane.xlu0 %68 }
  0x90   :  { %v71_v21 = vsel %vm38_vm0, %v69_v16, 0.0 }
  0x91   :  { %v72_v23 = vadd.f32 %v71_v21, %v70_v20 }
  0x93   :  { %v73_v27 = vmul.f32 %v72_v23, %v502_v25 }
  0x95   :  { %v515_v47 = vmul.f32 0.001953125, %v73_v27 }
  0x97   :  { %v120_v15 = vpop.xlane.xlu1 %119  ;;  %v193_v53 = vmul.f32 %v515_v47, %v515_v47 }
  0x98   :  { %v126_v24 = vsel %vm38_vm0, %v120_v15, 0.0 }
  0x9f   :  { %v148_v18 = vpop.xlane.xlu2 %147  ;;  %v125_v19 = vpop.xlane.xlu1 %124 }
  0xa0   :  { %v127_v22 = vsel %vm38_vm0, %v125_v19, 0.0  ;;  %v154_v31 = vsel %vm38_vm0, %v148_v18, 0.0 }
  0xa1   :  { %v128_v26 = vadd.f32 %v127_v22, %v126_v24 }
  0xa3   :  { %v189_v34 = vsub.f32 %v128_v26, %v73_v27 }
  0xa5   :  { %v510_v40 = vmul.f32 0.001953125, %v189_v34 }
  0xa7   :  { %v153_v29 = vpop.xlane.xlu2 %152  ;;  %v176_v30 = vpop.xlane.xlu0 %175  ;;  %v197_v48 = vmul.f32 %v510_v40, %v510_v40 }
  0xa8   :  { %v155_v32 = vsel %vm38_vm0, %v153_v29, 0.0  ;;  %v182_v33 = vsel %vm38_vm0, %v176_v30, 0.0 }
  0xa9   :  { %v156_v35 = vadd.f32 %v155_v32, %v154_v31  ;;  %v181_v36 = vpop.xlane.xlu1 %180 }
  0xaa   :  { %v183_v37 = vsel %vm38_vm0, %v181_v36, 0.0 }
  0xab   :  { %v187_v38 = vmul.f32 %v186_v28, %v156_v35  ;;  %v184_v39 = vadd.f32 %v183_v37, %v182_v33 }
  0xad   :  { %v185_v41 = vmul.f32 %v184_v39, %v502_v25 }
  0xaf   :  { %v188_v42 = vadd.f32 %v187_v38, %v185_v41  ;;  %v93_v43 = vpop.xlane.xlu2 %92  ;;  %v98_v44 = vpop.xlane.xlu0 %97 }
  0xb0   :  { %v99_v45 = vsel %vm38_vm0, %v93_v43, 0.0  ;;  %v100_v46 = vsel %vm38_vm0, %v98_v44, 0.0 }
  0xb1   :  { %v196_v49 = vmul.f32 0.001953125, %v188_v42  ;;  %v101_v50 = vadd.f32 %v100_v46, %v99_v45 }
  0xb3   :  { %v198_v51 = vsub.f32 %v196_v49, %v197_v48  ;;  %v102_v52 = vmul.f32 %v101_v50, %v502_v25 }
  0xb5   :  { %v199_v54 = vmax.f32 %v198_v51, 0.0  ;;  %v192_v55 = vmul.f32 0.001953125, %v102_v52 }
  0xb7   :  { %v228_v56 = vadd.f32 1e-05, %v199_v54  ;;  %v194_v57 = vsub.f32 %v192_v55, %v193_v53  ;;  %v367_v53 = vld [vmem:[%s554_s2 + $0xc] sm:$0xf]  ;;  %s412_s2 = smov [#allocation2]  }
  0xb8   :  { %s351_s26 = sshll.u32 %s412_s2, 4  ;;  %s352_s26 = int_to_ptr.vmem [resolvable:$true] %s351_s26 }
  0xb9   :  { %376 = vrsqrt.f32 %v228_v56  ;;  %v195_v58 = vmax.f32 %v194_v57, 0.0  ;;  %vm236_vm1 = vcmp.eq.f32.partialorder %v228_v56, inf  ;;  %v239_v18 = vand.u32 2147483648, %v228_v56 }
  0xba   :  { %vm238_vm2 = vcmp.eq.f32.partialorder %v228_v56, 0.0 }
  0xbb   :  { %v200_v59 = vadd.f32 1e-05, %v195_v58 }
  0xbd   :  { %378 = vrsqrt.f32 %v200_v59  ;;  %vm208_vm3 = vcmp.eq.f32.partialorder %v200_v59, inf  ;;  %v211_v23 = vand.u32 2147483648, %v200_v59  ;;  %vm210_vm4 = vcmp.eq.f32.partialorder %v200_v59, 0.0 }
  0xbf   :  { %v377_v62 = vpop.eup %376 }
  0xc0   :  { %v230_v0 = vmul.f32 %v377_v62, %v228_v56 }
  0xc2   :  { %v231_v7 = vmul.f32 %v377_v62, %v230_v0 }
  0xc3   :  { %v379_v9 = vpop.eup %378 }
  0xc4   :  { %v232_v10 = vmul.f32 0.5, %v231_v7  ;;  %v202_v11 = vmul.f32 %v379_v9, %v200_v59 }
  0xc6   :  { %v233_v12 = vsub.f32 1.5, %v232_v10  ;;  %v203_v13 = vmul.f32 %v379_v9, %v202_v11 }
  0xc8   :  { %v234_v14 = vmul.f32 %v377_v62, %v233_v12  ;;  %v204_v15 = vmul.f32 0.5, %v203_v13  ;;  %v411_v62 = vmov 839922192  }
  0xc9   :  { %v316_v63 = vunpack.c.l.s4 %v411_v62 }
  0xca   :  { %v235_v16 = vmul.f32 %v234_v14, %v228_v56  ;;  %v205_v17 = vsub.f32 1.5, %v204_v15 }
  0xcc   :  { %v237_v19 = vsel %vm236_vm1, %v228_v56, %v235_v16  ;;  %v206_v20 = vmul.f32 %v379_v9, %v205_v17  ;;  %v284_v56 = vpop.permute.xlu0 %283  ;;  %v317_v16 = vunpack.c.0.s8 %v316_v63 }
  0xcd   :  { %v240_v21 = vsel %vm238_vm2, %v239_v18, %v237_v19  ;;  %v287_v58 = vmul.f32 %v284_v56, %v440_v2  ;;  %v286_v0 = vmul.f32 %v284_v56, %v438_v1  ;;  %v288_v3 = vmul.f32 %v284_v56, %v445_v4 }
  0xce   :  { %380 = vrcp.f32 %v240_v21  ;;  %v207_v22 = vmul.f32 %v206_v20, %v200_v59  ;;  %v252_v30 = vand.u32 2147483648, %v240_v21  ;;  %v250_v33 = vand.u32 2147483647, %v240_v21 }
  0xcf   :  { %vm246_vm6 = vweird.f32 %v240_v21 }
  0xd0   :  { %v209_v24 = vsel %vm208_vm3, %v200_v59, %v207_v22  ;;  %v253_v36 = vor.u32 1.1754944e-38, %v252_v30  ;;  %vm251_vm8 = vcmp.eq.f32.partialorder %v250_v33, 8.507059e+37 }
  0xd1   :  { %v212_v26 = vsel %vm210_vm4, %v211_v23, %v209_v24 }
  0xd2   :  { %382 = vrcp.f32 %v212_v26  ;;  %v224_v39 = vand.u32 2147483648, %v212_v26  ;;  %v222_v43 = vand.u32 2147483647, %v212_v26  ;;  %vm218_vm10 = vweird.f32 %v212_v26 }
  0xd4   :  { %v381_v27 = vpop.eup %380  ;;  %v225_v45 = vor.u32 1.1754944e-38, %v224_v39  ;;  %vm223_vm12 = vcmp.eq.f32.partialorder %v222_v43, 8.507059e+37 }
  0xd5   :  { %v242_v28 = vmul.f32 %v381_v27, %v240_v21  ;;  %vm247_vm5 = vweird.f32 %v381_v27 }
  0xd6   :  { %vm248_vm7 = vmor %vm246_vm6, %vm247_vm5 }
  0xd7   :  { %v243_v29 = vsub.f32 1.0, %v242_v28 }
  0xd8   :  { %v383_v31 = vpop.eup %382 }
  0xd9   :  { %v244_v32 = vmul.f32 %v381_v27, %v243_v29  ;;  %v214_v34 = vmul.f32 %v383_v31, %v212_v26  ;;  %vm219_vm9 = vweird.f32 %v383_v31 }
  0xda   :  { %vm220_vm11 = vmor %vm218_vm10, %vm219_vm9 }
  0xdb   :  { %v245_v35 = vadd.f32 %v381_v27, %v244_v32  ;;  %v215_v37 = vsub.f32 1.0, %v214_v34 }
  0xdd   :  { %v249_v38 = vsel %vm248_vm7, %v381_v27, %v245_v35  ;;  %v216_v42 = vmul.f32 %v383_v31, %v215_v37 }
  0xde   :  { %v254_v41 = vsel %vm251_vm8, %v253_v36, %v249_v38 }
  0xdf   :  { %272 = vperm.xlu2 %373, %v254_v41   ;;  %v217_v44 = vadd.f32 %v383_v31, %v216_v42  ;;  %v257_v52 = vmul.f32 %v254_v41, %v510_v40 }
  0xe1   :  { %v221_v46 = vsel %vm220_vm11, %v383_v31, %v217_v44 }
  0xe2   :  { %v226_v48 = vsel %vm223_vm12, %v225_v45, %v221_v46 }
  0xe3   :  { %v259_v49 = vsub.f32 %v226_v48, %v254_v41  ;;  %v256_v51 = vmul.f32 %v226_v48, %v515_v47 }
  0xe5   :  { %v260_v50 = vmul.f32 %v259_v49, %v502_v25  ;;  %v258_v54 = vadd.f32 %v257_v52, %v256_v51  ;;  %v289_v25 = vmul.f32 %v284_v56, %v447_v5 }
  0xe7   :  { %292 = vperm.xlu2 %373, %v366_v61   ;;  %263 = vperm.xlu1 %375, %v260_v50  }
  0xef   :  { %336 = vperm.xlu2 %373, %v367_v53   ;;  %313 = vperm.xlu1 %375, %v258_v54  }
 0x139   :  { %v273_v55 = vpop.permute.xlu2 %272 }
 0x141   :  { %v293_v57 = vpop.permute.xlu2 %292 }
 0x142   :  { %v296_v10 = vadd.f32 %v293_v57, %v287_v58  ;;  %v298_v11 = vadd.f32 %v293_v57, %v289_v25  ;;  %v297_v17 = vadd.f32 %v293_v57, %v288_v3 }
 0x144   :  { %v326_v19 = vrot.slane %v296_v10, 4  ;;  %v327_v20 = vrot.slane %v298_v11, 4 }
 0x146   :  { %v329_v28 = vsel %vm38_vm0, %v297_v17, %v327_v20 }
 0x149   :  { %v337_v23 = vpop.permute.xlu2 %336 }
 0x14a   :  { %v341_v29 = vperm.slane %v337_v23, %v317_v16 }
 0x159   :  { %v264_v59 = vpop.permute.xlu1 %263 }
 0x15a   :  { %v266_v60 = vmul.f32 %v264_v59, %v438_v1  ;;  %v267_v47 = vmul.f32 %v264_v59, %v440_v2  ;;  %v268_v40 = vmul.f32 %v264_v59, %v445_v4  ;;  %v269_v61 = vmul.f32 %v264_v59, %v447_v5 }
 0x15b   :  { %v295_v2 = vadd.f32 %v293_v57, %v286_v0 }
 0x15c   :  { %v276_v7 = vadd.f32 %v273_v55, %v267_v47  ;;  %v278_v9 = vadd.f32 %v273_v55, %v269_v61  ;;  %v275_v12 = vadd.f32 %v273_v55, %v266_v60  ;;  %v277_v13 = vadd.f32 %v273_v55, %v268_v40 }
 0x15d   :  { %v328_v27 = vsel %vm38_vm0, %v295_v2, %v326_v19 }
 0x15e   :  { %v303_v14 = vrot.slane %v276_v7, 4  ;;  %v304_v15 = vrot.slane %v278_v9, 4 }
 0x160   :  { %v305_v18 = vsel %vm38_vm0, %v275_v12, %v303_v14  ;;  %v306_v5 = vsel %vm38_vm0, %v277_v13, %v304_v15 }
 0x161   :  { %v309_v1 = vmul.f32 %v305_v18, %v452_v6  ;;  %v310_v4 = vmul.f32 %v306_v5, %v458_v8  ;;  %v314_v21 = vpop.permute.xlu1 %313 }
 0x162   :  { %v318_v22 = vperm.slane %v314_v21, %v317_v16 }
 0x164   :  { %v320_v24 = vsub.f32 %v309_v1, %v318_v22  ;;  %v321_v26 = vsub.f32 %v310_v4, %v318_v22 }
 0x166   :  { %v332_v30 = vmul.f32 %v328_v27, %v320_v24  ;;  %v333_v6 = vmul.f32 %v329_v28, %v321_v26 }
 0x168   :  { %v343_v31 = vadd.f32 %v341_v29, %v332_v30  ;;  %v344_v8 = vadd.f32 %v341_v29, %v333_v6 }
 0x16a   :  { %345 = vst [vmem:[#allocation2] sm:$0xff] %v343_v31 }
 0x16b   :  { %346 = vst [vmem:[#allocation2 + $0x8] sm:$0xff] %v344_v8 }
 0x16c   :  { %359 = dma.vmem_to_hbm [thread:$0]  %s352_s26, 256, %s354_s29, [#allocation3], %s413_s30, %s413_s30, %s414_s4  }
 0x16d   :  { %408 = dma.done.wait [#allocation3], 256  }
 0x16e   :  { %409 = vsyncadd [#allocation3], 4294967040 }
 0x16f   :  { %364 = vsyncpa [#allocation3], 1 }

</bundles_post_ra>
